<compile_context>
chip_gen: v5e
topology: v5e:2x2
jax: 0.10.0
libtpu: 0.0.40
codegen_flags: <defaults>
</compile_context>

<pallas_src>
import functools

import jax
import jax.numpy as jnp
from jax import lax
from jax.experimental import pallas as pl
from jax.experimental.pallas import tpu as pltpu

LANES = 128
SUBLANES = 8
MAX_BLOCK_ROWS = 8192     # (8192, 128) f32 block = 4 MiB per input per block
MIN_GRID_STEPS = 4        # keep >= 4 grid steps so both v7x TCs get work
_K_LIVE_F32 = 8           # rough bound on live f32 temporaries/elem (VMEM budget)


def _round_up(x, m):
    return (x + m - 1) // m * m


@functools.lru_cache(maxsize=None)
def _vmem_limit_and_budget():
    """Scoped-VMEM limit to request and the block-sizing budget derived from it."""
    try:
        cap = int(pltpu.get_tpu_info().vmem_capacity_bytes)
    except Exception:
        cap = 64 * 1024 * 1024                    # conservative (v7x-sized) fallback
    limit = min(64 * 1024 * 1024, cap * 3 // 4)   # v5e/v6e: 64 MiB, v7x: 48 MiB
    budget = limit * 3 // 4                       # headroom for compiler scratch
    return limit, budget


def _focal_elementwise(x_in, y_in, alpha, gamma):
    """Per-element focal sigmoid loss (same math as the PyTorch forward)."""
    x = x_in.astype(jnp.float32)
    y = y_in.astype(jnp.float32)
    # Shared stable-softplus pieces: one exp + one log1p per element.
    #   e = exp(-|x|)
    #   log(sigmoid(x))     = -(relu(-x) + log1p(e))
    #   log(1 - sigmoid(x)) = -(relu(x)  + log1p(e))
    #   sigmoid(x)          = where(x >= 0, 1, e) / (1 + e)
    e = jnp.exp(-jnp.abs(x))
    sp = jnp.log1p(e)
    log_p = -(jnp.maximum(-x, 0.0) + sp)
    log_1p = -(jnp.maximum(x, 0.0) + sp)
    # Full-precision reciprocal keeps parity with the PyTorch/JAX reference
    # (approx=True would only shave a few VALU Newton steps on v7x).
    probs = jnp.where(x >= 0.0, 1.0, e) * pl.reciprocal(1.0 + e, approx=False)
    d = y - probs
    if gamma == 2.0:
        coeff = -(d * d)                 # avoid pow -> log+exp on the EUP
    elif gamma == 1.0:
        coeff = -jnp.abs(d)
    else:
        coeff = -(jnp.abs(d) ** gamma)
    ce = alpha * y * log_p + (1.0 - alpha) * (1.0 - y) * log_1p
    return ce * coeff


def _focal_partial_sum_kernel(x_ref, y_ref, out_ref, *,
                              alpha, gamma, total, block_rows, tail):
    """Each grid step writes one lane-dense (1, 1, 128) partial sum (no carry)."""
    loss = _focal_elementwise(x_ref[...], y_ref[...], alpha, gamma)

    if not tail:
        out_ref[...] = jnp.sum(loss, axis=0, keepdims=True).reshape(1, 1, LANES)
    else:
        pid = pl.program_id(0)
        last = pl.num_programs(0) - 1

        @pl.when(pid != last)
        def _():
            out_ref[...] = jnp.sum(loss, axis=0, keepdims=True).reshape(1, 1, LANES)

        @pl.when(pid == last)
        def _():
            # Mask pad zeros / out-of-bounds rows in the final block only
            # (flat indices fit in int32; guarded by an assert in the wrapper).
            row = lax.broadcasted_iota(jnp.int32, loss.shape, 0)
            col = lax.broadcasted_iota(jnp.int32, loss.shape, 1)
            flat = (pid * block_rows + row) * LANES + col
            masked = jnp.where(flat < total, loss, 0.0)
            out_ref[...] = jnp.sum(masked, axis=0, keepdims=True).reshape(1, 1, LANES)


def _focal_map_kernel(x_ref, y_ref, out_ref, *, alpha, gamma):
    out_ref[...] = _focal_elementwise(
        x_ref[...], y_ref[...], alpha, gamma).astype(out_ref.dtype)


def focal_loss(logits, label, alpha=0.25, gamma=2.0, reduction="mean",
               out_dtype=None, _max_block_rows=None):
    """JAX/Pallas equivalent of FocalLoss.forward (forward pass only).

    `label` may be kept in its storage dtype (f32 / bf16 / int8); it is cast to
    f32 inside the kernel, so no extra HBM pass is spent casting it in the
    wrapper.  `out_dtype` (reduction='none' only) defaults to float32 for
    PyTorch (amp cast_inputs=float32) parity.
    """
    assert logits.shape == label.shape
    total = int(logits.size)
    # The in-kernel flat tail-mask uses int32 indices.
    assert total < 2 ** 31, "focal_loss: tensor too large for int32 flat indexing"
    alpha = float(alpha)
    gamma = float(gamma)

    x = logits.reshape(-1)
    y = label.reshape(-1)

    x_item = jnp.dtype(x.dtype).itemsize
    y_item = jnp.dtype(y.dtype).itemsize
    if reduction == "none":
        out_dtype = jnp.dtype(out_dtype) if out_dtype is not None else jnp.dtype(jnp.float32)
        o_item = out_dtype.itemsize
    elif reduction in ("mean", "sum"):
        o_item = 0
    else:
        raise ValueError(f"unknown reduction: {reduction!r}")

    # Sublane packing multiple of the narrowest streamed dtype
    # (f32 -> 8, bf16 -> 16, int8/fp8 -> 32 rows).
    items = [x_item, y_item] + ([o_item] if o_item else [])
    sub = max(SUBLANES, max(32 // it for it in items))

    # Pad (only when needed) so the flat size maps to whole (sub, 128) tiles;
    # for the common NCHW sizes this is a no-op and the reshapes are free.
    padded = _round_up(total, sub * LANES)
    if padded != total:
        x = jnp.pad(x, (0, padded - total))
        y = jnp.pad(y, (0, padded - total))
    rows = padded // LANES

    # Block sizing: as big as the per-generation VMEM budget allows (double
    # buffered inputs/outputs + headroom for in-kernel f32 temporaries), but
    # split into >= MIN_GRID_STEPS steps so the "parallel" grid axis can be
    # sharded across both v7x TensorCores.
    vmem_limit, vmem_budget = _vmem_limit_and_budget()
    per_row = 2 * LANES * (x_item + y_item + o_item) + _K_LIVE_F32 * LANES * 4
    cap = min(MAX_BLOCK_ROWS, max(sub, (vmem_budget // per_row) // sub * sub))
    if _max_block_rows is not None:
        cap = min(cap, _round_up(int(_max_block_rows), sub))
    target = _round_up(pl.cdiv(rows, MIN_GRID_STEPS), sub)
    block_rows = max(sub, min(rows, cap, target))
    nb = pl.cdiv(rows, block_rows)                      # grid size
    tail = (nb * block_rows * LANES) != total           # last block ragged?

    x2 = x.reshape(rows, LANES)
    y2 = y.reshape(rows, LANES)
    in_blk = pl.BlockSpec((block_rows, LANES), lambda i: (i, 0))
    cparams = pltpu.CompilerParams(dimension_semantics=("parallel",),
                                   vmem_limit_bytes=int(vmem_limit))

    if reduction == "none":
        kernel = functools.partial(_focal_map_kernel, alpha=alpha, gamma=gamma)
        out2 = pl.pallas_call(
            kernel,
            out_shape=jax.ShapeDtypeStruct((rows, LANES), out_dtype),
            grid_spec=pltpu.PrefetchScalarGridSpec(
                num_scalar_prefetch=0,
                grid=(nb,),
                in_specs=[in_blk, in_blk],
                out_specs=pl.BlockSpec((block_rows, LANES), lambda i: (i, 0)),
            ),
            compiler_params=cparams,
        )(x2, y2)
        out_flat = out2.reshape(-1)
        if padded != total:
            # TODO(synk): for ragged sizes this slice is an extra HBM pass over
            # the output; shape-preserving tiling would avoid it but needs
            # per-shape BlockSpecs.
            out_flat = lax.slice(out_flat, (0,), (total,))
        return out_flat.reshape(logits.shape)

    kernel = functools.partial(
        _focal_partial_sum_kernel, alpha=alpha, gamma=gamma,
        total=total, block_rows=int(block_rows), tail=bool(tail))
    partials = pl.pallas_call(
        kernel,
        out_shape=jax.ShapeDtypeStruct((nb, 1, LANES), jnp.float32),
        grid_spec=pltpu.PrefetchScalarGridSpec(
            num_scalar_prefetch=0,
            grid=(nb,),
            in_specs=[in_blk, in_blk],
            out_specs=pl.BlockSpec((1, 1, LANES), lambda i: (i, 0, 0)),
        ),
        compiler_params=cparams,
    )(x2, y2)

    loss_sum = jnp.sum(partials)        # tiny (nb, 1, 128) finish in XLA
    if reduction == "sum":
        return loss_sum
    return loss_sum / jnp.float32(total)


def _focal_loss_ref(logits, label, alpha=0.25, gamma=2.0, reduction="mean"):
    """Pure-JAX reference for verification."""
    x = logits.astype(jnp.float32)
    y = label.astype(jnp.float32)
    probs = jax.nn.sigmoid(x)
    coeff = -(jnp.abs(y - probs) ** gamma)
    log_probs = -jnp.logaddexp(0.0, -x)
    log_1_probs = -jnp.logaddexp(0.0, x)
    ce = alpha * y * log_probs + (1.0 - alpha) * (1.0 - y) * log_1_probs
    loss = ce * coeff
    if reduction == "mean":
        return jnp.mean(loss)
    if reduction == "sum":
        return jnp.sum(loss)
    return loss


if __name__ == "__main__":
    key = jax.random.PRNGKey(0)
    k1, k2, k3, k4 = jax.random.split(key, 4)

    # Small NCHW shapes consistent with the module's usage.
    B, C, H, W = 2, 4, 16, 16
    logits = jax.random.normal(k1, (B, C, H, W), dtype=jnp.float32)
    label = jax.random.bernoulli(k2, 0.5, (B, C, H, W)).astype(jnp.float32)

    out = jax.block_until_ready(
        focal_loss(logits, label, alpha=0.25, gamma=2.0, reduction="mean"))
    ref = _focal_loss_ref(logits, label, 0.25, 2.0, "mean")
    assert jnp.allclose(out, ref, rtol=1e-5, atol=1e-6), (out, ref)

    # Labels streamed in bf16 (cast happens in-kernel; 0/1 are exact in bf16).
    out_bf = jax.block_until_ready(
        focal_loss(logits, label.astype(jnp.bfloat16), reduction="mean"))
    assert jnp.allclose(out_bf, ref, rtol=1e-5, atol=1e-6), (out_bf, ref)

    # reduction='none' elementwise map.
    out_map = jax.block_until_ready(focal_loss(logits, label, reduction="none"))
    ref_map = _focal_loss_ref(logits, label, 0.25, 2.0, "none")
    assert out_map.shape == logits.shape and out_map.dtype == jnp.float32
    assert jnp.allclose(out_map, ref_map, rtol=1e-5, atol=1e-6)

    # Ragged shape (size not a multiple of the tile): exercises the in-kernel
    # tail mask; the forced small block size also exercises the multi-block
    # parallel grid with a partially valid last block.
    B2, C2, H2, W2 = 2, 3, 33, 47
    logits2 = jax.random.normal(k3, (B2, C2, H2, W2), dtype=jnp.float32)
    label2 = jax.random.bernoulli(k4, 0.5, (B2, C2, H2, W2)).astype(jnp.float32)
    ref2 = _focal_loss_ref(logits2, label2, 0.25, 2.0, "sum")
    out2a = jax.block_until_ready(focal_loss(logits2, label2, reduction="sum"))
    out2b = jax.block_until_ready(
        focal_loss(logits2, label2, reduction="sum", _max_block_rows=8))
    assert jnp.allclose(out2a, ref2, rtol=1e-4, atol=1e-3), (out2a, ref2)
    assert jnp.allclose(out2b, ref2, rtol=1e-4, atol=1e-3), (out2b, ref2)

    print("KERNEL_OK")
</pallas_src>

<mosaic_0001>
module attributes {stable_mosaic.version = 11 : i64} {
  func.func @_focal_partial_sum_kernel(%arg0: i32, %arg1: memref<8x128xf32, #tpu.memory_space<vmem>>, %arg2: memref<8x128xf32, #tpu.memory_space<vmem>>, %arg3: memref<1x1x128xf32, #tpu.memory_space<vmem>>) attributes {dimension_semantics = [#tpu.dimension_semantics<parallel>], iteration_bounds = array<i64: 2>, scalar_prefetch = 0 : i64, scratch_operands = 0 : i64, tpu.core_type = #tpu.core_type<tc>, window_params = [{transform_indices = @transform_0, window_bounds = array<i64: 8, 128>}, {transform_indices = @transform_1, window_bounds = array<i64: 8, 128>}, {transform_indices = @transform_2, window_bounds = array<i64: 1, 1, 128>}]} {
    %c0 = arith.constant 0 : index
    %c0_0 = arith.constant 0 : index
    %0 = vector.load %arg1[%c0, %c0_0] : memref<8x128xf32, #tpu.memory_space<vmem>>, vector<8x128xf32>
    %c0_1 = arith.constant 0 : index
    %c0_2 = arith.constant 0 : index
    %1 = vector.load %arg2[%c0_1, %c0_2] : memref<8x128xf32, #tpu.memory_space<vmem>>, vector<8x128xf32>
    %2 = math.absf %0 : vector<8x128xf32>
    %cst = arith.constant 0.000000e+00 : f32
    %3 = vector.broadcast %cst : f32 to vector<8x128xf32>
    %4 = arith.subf %3, %2 : vector<8x128xf32>
    %5 = math.exp %4 : vector<8x128xf32>
    %6 = math.log1p %5 : vector<8x128xf32>
    %cst_3 = arith.constant 0.000000e+00 : f32
    %7 = vector.broadcast %cst_3 : f32 to vector<8x128xf32>
    %8 = arith.subf %7, %0 : vector<8x128xf32>
    %cst_4 = arith.constant 0.000000e+00 : f32
    %9 = vector.broadcast %cst_4 : f32 to vector<8x128xf32>
    %10 = arith.maximumf %8, %9 : vector<8x128xf32>
    %11 = arith.addf %10, %6 : vector<8x128xf32>
    %cst_5 = arith.constant 0.000000e+00 : f32
    %12 = vector.broadcast %cst_5 : f32 to vector<8x128xf32>
    %13 = arith.subf %12, %11 : vector<8x128xf32>
    %cst_6 = arith.constant 0.000000e+00 : f32
    %14 = vector.broadcast %cst_6 : f32 to vector<8x128xf32>
    %15 = arith.maximumf %0, %14 : vector<8x128xf32>
    %16 = arith.addf %15, %6 : vector<8x128xf32>
    %cst_7 = arith.constant 0.000000e+00 : f32
    %17 = vector.broadcast %cst_7 : f32 to vector<8x128xf32>
    %18 = arith.subf %17, %16 : vector<8x128xf32>
    %cst_8 = arith.constant 0.000000e+00 : f32
    %19 = vector.broadcast %cst_8 : f32 to vector<8x128xf32>
    %20 = arith.cmpf oge, %0, %19 : vector<8x128xf32>
    %cst_9 = arith.constant 1.000000e+00 : f32
    %21 = vector.broadcast %cst_9 : f32 to vector<8x128xf32>
    %22 = arith.select %20, %21, %5 : vector<8x128xi1>, vector<8x128xf32>
    %cst_10 = arith.constant 1.000000e+00 : f32
    %23 = vector.broadcast %cst_10 : f32 to vector<8x128xf32>
    %24 = arith.addf %23, %5 : vector<8x128xf32>
    %25 = tpu.reciprocal %24 : vector<8x128xf32> -> vector<8x128xf32>
    %26 = arith.mulf %22, %25 : vector<8x128xf32>
    %27 = arith.subf %1, %26 : vector<8x128xf32>
    %28 = arith.mulf %27, %27 : vector<8x128xf32>
    %cst_11 = arith.constant 0.000000e+00 : f32
    %29 = vector.broadcast %cst_11 : f32 to vector<8x128xf32>
    %30 = arith.subf %29, %28 : vector<8x128xf32>
    %cst_12 = arith.constant 2.500000e-01 : f32
    %31 = vector.broadcast %cst_12 : f32 to vector<8x128xf32>
    %32 = arith.mulf %31, %1 : vector<8x128xf32>
    %33 = arith.mulf %32, %13 : vector<8x128xf32>
    %cst_13 = arith.constant 1.000000e+00 : f32
    %34 = vector.broadcast %cst_13 : f32 to vector<8x128xf32>
    %35 = arith.subf %34, %1 : vector<8x128xf32>
    %cst_14 = arith.constant 7.500000e-01 : f32
    %36 = vector.broadcast %cst_14 : f32 to vector<8x128xf32>
    %37 = arith.mulf %36, %35 : vector<8x128xf32>
    %38 = arith.mulf %37, %18 : vector<8x128xf32>
    %39 = arith.addf %33, %38 : vector<8x128xf32>
    %40 = arith.mulf %39, %30 : vector<8x128xf32>
    %cst_15 = arith.constant dense<0.000000e+00> : vector<128xf32>
    %41 = vector.multi_reduction <add>, %40, %cst_15 [0] : vector<8x128xf32> to vector<128xf32>
    %42 = vector.shape_cast %41 : vector<128xf32> to vector<1x128xf32>
    %43 = vector.shape_cast %42 : vector<1x128xf32> to vector<1x1x128xf32>
    %c0_16 = arith.constant 0 : index
    %c0_17 = arith.constant 0 : index
    %c0_18 = arith.constant 0 : index
    %44 = vector.load %arg3[%c0_16, %c0_17, %c0_18] : memref<1x1x128xf32, #tpu.memory_space<vmem>>, vector<1x1x128xf32>
    tpu.vector_store %arg3[%c0_16, %c0_17, %c0_18], %43 {strides = array<i32>} : memref<1x1x128xf32, #tpu.memory_space<vmem>>, vector<1x1x128xf32>,
    return
  }
  func.func @transform_0(%arg0: i32) -> (i32, i32) {
    %c0_i32 = arith.constant 0 : i32
    %c0_i32_0 = arith.constant 0 : i32
    return %arg0, %c0_i32 : i32, i32
  }
  func.func @transform_1(%arg0: i32) -> (i32, i32) {
    %c0_i32 = arith.constant 0 : i32
    %c0_i32_0 = arith.constant 0 : i32
    return %arg0, %c0_i32 : i32, i32
  }
  func.func @transform_2(%arg0: i32) -> (i32, i32, i32) {
    %c0_i32 = arith.constant 0 : i32
    %c0_i32_0 = arith.constant 0 : i32
    %c0_i32_1 = arith.constant 0 : i32
    return %arg0, %c0_i32, %c0_i32_0 : i32, i32, i32
  }
}

</mosaic_0001>

<bundles_post_ra>
// kernel: tpu_custom_call.1
= control target key start
LH: loop header
LB: loop body
LE: loop exit
PB: predicated region body
PF: predicated region fallthrough
CT: control target
= control target key end

     0   :  { %7 = vsyncpa [#allocation3], 0  ;;  %s735_s0 = inlined_call_operand.hbm [shape: f32[16,128], index: 0, kind: input, shape index: {}]   ;;  %s736_s1 = inlined_call_operand.hbm [shape: f32[16,128], index: 1, kind: input, shape index: {}]   ;;  %s737_s2 = inlined_call_operand.hbm [shape: f32[2,1,128], index: 2, kind: output, shape index: {}]  }
   0x1   :  { %9 = vsyncpa [#allocation3 + $0x1], 0 }
   0x2   :  { %10 = vsyncpa [#allocation6], 0 }
   0x3   :  { %12 = vsyncpa [#allocation6 + $0x1], 0 }
   0x4   :  { %13 = vsyncpa [#allocation4], 0 }
   0x5   :  { %15 = vsyncpa [#allocation4 + $0x1], 0  ;;  %s574_s9 = smov 0   ;;  %s576_s10 = smov 0  }
   0x6   :  { %s578_s11 = smov 0   ;;  %s580_s12 = smov 0  }
   0x7 LB: > { %s595_s13 = sadd.s32 4294967295, %s557_s12   ;;  %s358_s14 = sadd.s32 4294967294, %s557_s12   ;;  %s557_s12 = sphi %s580_s12, %s748_s12   ;;  %s553_s11 = sphi %s578_s11, %s747_s11   ;;  %s549_s10 = sphi %s576_s10, %s746_s10   ;;  %s545_s9 = sphi %s574_s9, %s745_s9  }
   0x8   : > { %s599_s15 = sadd.s32 1, %s557_s12   ;;  %s28_s16 = sadd.s32 1, %s553_s11 }
   0x9   : > { %s25_s17 = ssub.s32 %s557_s12, %s599_s15  ;;  %p35_p0 = scmp.ne.s32.totalorder %s553_s11, %s549_s10 }
   0xa   : > { %p26_p1 = scmp.eq.s32.totalorder %s25_s17, 0  ;;  %p36_p2 = scmp.eq.s32.totalorder %s557_s12, 0 }
   0xb   : > { %p41_p3 = scmp.ne.s32.totalorder %s549_s10, %s545_s9  ;;  %p42_p4 = scmp.eq.s32.totalorder %s595_s13, 0 }
   0xc   : > { %s611_s18 = scalar_select %p26_p1, %s553_s11, %s28_s16  }
   0xd   : > { %p613_p5 = por %p36_p2, %p35_p0  ;;  %p617_p6 = por %p42_p4, %p41_p3 }
   0xe   : > { %p91_p7 = scmp.eq.s32.totalorder %s595_s13, 1  ;;  %p97_p8 = scmp.eq.s32.totalorder %s358_s14, 1 }
   0xf   : > { %p387_p10 = scmp.lt.s32.totalorder %s557_s12, 2  ;;  %s633_s23 = sand.u32 1, %s553_s11  }
  0x10   : > { %p624_p11 = por %p91_p7, %p35_p0  ;;  %p628_p12 = por %p97_p8, %p41_p3 }
  0x11   : > { %s362_s24 = sshll.u32 %s557_s12, 3  ;;  %s361_s25 = sshll.u32 %s633_s23, 3 }
  0x12   : > { %s125_s28 = scalar_lea.hbm %s735_s0, %s362_s24  ;;  %s121_s30 = scalar_lea.vmem [#allocation2], %s361_s25 }
  0x13   : > { %s127_s29 = sshll.u32 %s125_s28, 4  ;;  %s129_s3 = sshll.u32 %s121_s30, 4  ;;  %s128_s29 = int_to_ptr.hbm [resolvable:$true] %s127_s29  ;;  %s130_s3 = int_to_ptr.vmem [resolvable:$true] %s129_s3 }
  0x14   : > { %p642_p13 = pnand %p387_p10, %p613_p5  ;;  %p365_p0 = scmp.ge.s32.totalorder %s557_s12, 1 }
  0x15   : > { %p153_p1 = scmp.lt.s32.totalorder %s557_s12, 3  ;;  %s118_s5 = scalar_lea.sflag [#allocation3], %s633_s23 }
  0x16   : > { %s427_s6 = sshra.s32 %s128_s29, 4  ;;  %p431_p3 = pneg %p642_p13  ;;  %s428_s6 = int_to_ptr.hbm [resolvable:$true] %s427_s6 }
  0x17   : > { %s429_s7 = scalar_lea.hbm %s428_s6, 8  ;;  %s434_s16 = scalar_lea.hbm %s735_s0, 16 }
  0x18   : > { %p430_p2 = scmp.ne.s32.totalorder %s428_s6, %s429_s7  ;;  %p435_p5 = scmp.lt.s32.totalorder %s428_s6, %s735_s0 }
  0x19   : > { %p436_p8 = scmp.lt.s32.totalorder %s434_s16, %s429_s7 }
  0x1a   : > { %p432_p4 = pnand %p431_p3, %p430_p2 }
  0x1b   : > { %p437_p10 = por %p436_p8, %p435_p5 }
  0x1c   : > { %p433_p7 = pneg %p432_p4 }
  0x1e   : > { %p438_p9 = pnand %p437_p10, %p433_p7 }
  0x20   : > { %441 = shalt.err (!%p438_p9)
}
  0x21   : > { %379 = dma.hbm_to_vmem [thread:$0]  (!%p642_p13), %s128_s29, 128, %s130_s3, %s118_s5  }
  0x22   : > { %p666_p2 = pnand %p365_p0, %p153_p1  ;;  %s144_s30 = scalar_lea.hbm %s736_s1, %s362_s24 }
  0x23   : > { %s146_s6 = sshll.u32 %s144_s30, 4  ;;  %s140_s7 = scalar_lea.vmem [#allocation5], %s361_s25  ;;  %s147_s6 = int_to_ptr.hbm [resolvable:$true] %s146_s6 }
  0x24   : > { %s148_s8 = sshll.u32 %s140_s7, 4  ;;  %s137_s14 = scalar_lea.sflag [#allocation6], %s633_s23  ;;  %s149_s8 = int_to_ptr.vmem [resolvable:$true] %s148_s8 }
  0x25   : > { %s457_s16 = sshra.s32 %s147_s6, 4  ;;  %s464_s5 = scalar_lea.hbm %s736_s1, 16  ;;  %s458_s16 = int_to_ptr.hbm [resolvable:$true] %s457_s16 }
  0x26   : > { %s459_s17 = scalar_lea.hbm %s458_s16, 8  ;;  %p465_p4 = scmp.lt.s32.totalorder %s458_s16, %s736_s1 }
  0x27   : > { %p460_p9 = scmp.ne.s32.totalorder %s458_s16, %s459_s17  ;;  %p466_p7 = scmp.lt.s32.totalorder %s464_s5, %s459_s17 }
  0x29   : > { %p462_p0 = pnand %p460_p9, %p431_p3  ;;  %p467_p5 = por %p466_p7, %p465_p4 }
  0x2b   : > { %p463_p1 = pneg %p462_p0 }
  0x2d   : > { %p468_p8 = pnand %p467_p5, %p463_p1 }
  0x2f   : > { %471 = shalt.err (!%p468_p8)
}
  0x30   : > { %382 = dma.hbm_to_vmem [thread:$0]  (!%p642_p13), %s147_s6, 128, %s149_s8, %s137_s14  }
  0x31   : > { %157 = sbr.rel (%p666_p2) target bundleno = 116 (0x74), region = 28  ;;  %s688_s23 = sand.u32 (!%p666_p2), 1, %s549_s10  }
  0x32   : > { %s366_s25 = sshll.u32 (!%p666_p2), %s688_s23, 3  ;;  %s160_s27 = scalar_lea.sflag (!%p666_p2), [#allocation3], %s688_s23 }
  0x33   : > { %s163_s28 = scalar_lea.vmem (!%p666_p2), [#allocation2], %s366_s25 }
  0x36   : > { %532 = dma.done.wait (%p617_p6), %s160_s27, 128  }
  0x37   : > { %534 = vsyncadd (%p617_p6), %s160_s27, 4294967168  ;;  %s170_s4 = scalar_lea.sflag [#allocation6], %s688_s23  ;;  %s173_s30 = scalar_lea.vmem [#allocation5], %s366_s25 }
  0x38   : > { %536 = dma.done.wait (%p617_p6), %s170_s4, 128  }
  0x39   : > { %538 = vsyncadd (%p617_p6), %s170_s4, 4294967168  ;;  %v199_v0 = vld [vmem:[%s163_s28] sm:$0xff]  ;;  %v200_v10 = vld [vmem:[%s173_s30] sm:$0xff]  ;;  %s265_s6 = scalar_lea.hbm %s737_s2, %s595_s13  ;;  %s198_s7 = scalar_lea.vmem [#allocation7], %s688_s23 }
  0x3a   : > { %v201_v1 = vand.u32 2147483647, %v199_v0  ;;  %v214_v9 = vsub.f32 0.0, %v199_v0  ;;  %v218_v14 = vmax.f32 %v199_v0, 0.0  ;;  %v244_v18 = vsub.f32 1.0, %v200_v10  ;;  %s267_s8 = sshll.u32 %s198_s7, 4  ;;  %s268_s8 = int_to_ptr.vmem [resolvable:$true] %s267_s8 }
  0x3b   : > { %vm221_vm3 = vcmp.ge.f32.partialorder %v199_v0, 0.0  ;;  %v242_v27 = vmul.f32 0.25, %v200_v10  ;;  %s269_s14 = sshll.u32 %s265_s6, 4  ;;  %s257_s16 = scalar_lea.sflag [#allocation4], %s688_s23  ;;  %s270_s14 = int_to_ptr.hbm [resolvable:$true] %s269_s14 }
  0x3c   : > { %v202_v2 = vsub.f32 0.0, %v201_v1  ;;  %v215_v13 = vmax.f32 %v214_v9, 0.0  ;;  %v245_v28 = vmul.f32 0.75, %v244_v18  ;;  %s501_s17 = sshra.s32 %s270_s14, 4  ;;  %s507_s13 = scalar_lea.hbm %s737_s2, 2  ;;  %s502_s17 = int_to_ptr.hbm [resolvable:$true] %s501_s17 }
  0x3d   : > { %s503_s29 = scalar_lea.hbm %s502_s17, 1  ;;  %p508_p10 = scmp.lt.s32.totalorder %s502_s17, %s737_s2 }
  0x3e   : > { %v203_v3 = vmul.f32 1.442695, %v202_v2  ;;  %p504_p6 = scmp.ne.s32.totalorder %s502_s17, %s503_s29  ;;  %p509_p2 = scmp.lt.s32.totalorder %s507_s13, %s503_s29 }
  0x40   : > { %421 = vpow2.f32 %v203_v3  ;;  %p505_p13 = pnand %p504_p6, %p624_p11  ;;  %p510_p9 = por %p509_p2, %p508_p10 }
  0x42   : > { %p506_p3 = pneg %p505_p13 }
  0x44   : > { %p511_p0 = pnand %p510_p9, %p506_p3 }
  0x46   : > { %v422_v4 = vpop.eup %421 }
  0x47   : > { %v205_v5 = vadd.f32 1.0, %v422_v4  ;;  %v208_v6 = vmul.f32 -0.5, %v422_v4  ;;  %v211_v8 = vand.u32 2147483647, %v422_v4  ;;  %v222_v32 = vsel %vm221_vm3, 1.0, %v422_v4 }
  0x49   : > { %423 = vlog2.f32 %v205_v5  ;;  %v209_v7 = vadd.f32 1.0, %v208_v6  ;;  %vm212_vm0 = vcmp.lt.f32.partialorder %v211_v8, 0.0004427343  ;;  %vm229_vm1 = vweird.f32 %v205_v5 }
  0x4a   : > { %425 = vrcp.f32 %v205_v5  ;;  %v233_v20 = vand.u32 2147483647, %v205_v5  ;;  %v235_v21 = vand.u32 2147483648, %v205_v5 }
  0x4b   : > { %v210_v11 = vmul.f32 %v422_v4, %v209_v7 }
  0x4c   : > { %v236_v26 = vor.u32 1.1754944e-38, %v235_v21  ;;  %vm234_vm5 = vcmp.eq.f32.partialorder %v233_v20, 8.507059e+37 }
  0x4f   : > { %v424_v12 = vpop.eup %423 }
  0x50   : > { %v426_v15 = vpop.eup %425  ;;  %v207_v16 = vmul.f32 0.6931472, %v424_v12 }
  0x51   : > { %v225_v17 = vmul.f32 %v426_v15, %v205_v5  ;;  %vm230_vm2 = vweird.f32 %v426_v15 }
  0x52   : > { %v213_v19 = vsel %vm212_vm0, %v210_v11, %v207_v16  ;;  %vm231_vm4 = vmor %vm229_vm1, %vm230_vm2 }
  0x53   : > { %v216_v22 = vadd.f32 %v215_v13, %v213_v19  ;;  %v219_v23 = vadd.f32 %v218_v14, %v213_v19  ;;  %v226_v24 = vsub.f32 1.0, %v225_v17 }
  0x55   : > { %v227_v25 = vmul.f32 %v426_v15, %v226_v24  ;;  %v217_v29 = vsub.f32 0.0, %v216_v22  ;;  %v220_v30 = vsub.f32 0.0, %v219_v23 }
  0x57   : > { %v228_v31 = vadd.f32 %v426_v15, %v227_v25  ;;  %v243_v36 = vmul.f32 %v242_v27, %v217_v29  ;;  %v246_v37 = vmul.f32 %v245_v28, %v220_v30 }
  0x59   : > { %v232_v33 = vsel %vm231_vm4, %v426_v15, %v228_v31  ;;  %v247_v40 = vadd.f32 %v246_v37, %v243_v36 }
  0x5a   : > { %v237_v34 = vsel %vm234_vm5, %v236_v26, %v232_v33 }
  0x5b   : > { %v238_v35 = vmul.f32 %v237_v34, %v222_v32 }
  0x5d   : > { %v239_v38 = vsub.f32 %v200_v10, %v238_v35 }
  0x5f   : > { %v240_v39 = vmul.f32 %v239_v38, %v239_v38 }
  0x61   : > { %v241_v41 = vsub.f32 0.0, %v240_v39 }
  0x63   : > { %v248_v42 = vmul.f32 %v247_v40, %v241_v41 }
  0x65   : > { %v249_v43 = vrot.slane %v248_v42, 4 }
  0x67   : > { %v250_v44 = vadd.f32 %v249_v43, %v248_v42 }
  0x69   : > { %v251_v45 = vrot.slane %v250_v44, 2 }
  0x6b   : > { %v252_v46 = vadd.f32 %v251_v45, %v250_v44 }
  0x6d   : > { %v253_v47 = vrot.slane %v252_v46, 1 }
  0x6f   : > { %v254_v48 = vadd.f32 %v253_v47, %v252_v46 }
  0x71   : > { %255 = vst [vmem:[%s198_s7] sm:$0x1] %v254_v48 }
  0x72   : > { %514 = shalt.err (!%p511_p0)
}
  0x73   : > { %374 = dma.vmem_to_hbm [thread:$0]  (%p624_p11), %s268_s8, 16, %s270_s14, %s257_s16  }
  0x74 PF: > { %s281_s23 = sand.u32 1, %s545_s9   ;;  %p744_p1 = scmp.ge.s32.totalorder %s557_s12, 2 }
  0x75   : > { %s282_s25 = scalar_lea.sflag [#allocation4], %s281_s23 }
  0x76   : > { %p384_p4 = pnand %p744_p1, %p628_p12 }
  0x78   : > { %p385_p7 = pneg %p384_p4 }
  0x7a   : > { %540 = dma.done.wait (%p385_p7), %s282_s25, 16  }
  0x7b   : > { %542 = vsyncadd (%p385_p7), %s282_s25, 4294967280  ;;  %p18_p5 = scmp.ge.s32.totalorder %s599_s15, 4   ;;  %s745_s9 = smov %s549_s10 }
  0x7c   : > { %s746_s10 = smov %s553_s11  ;;  %s747_s11 = smov %s611_s18 }
  0x7d   : > { %s748_s12 = smov %s599_s15  ;;  %20 = sbr.rel (!%p18_p5) target bundleno = 7 (0x7), region = 86 }
  0x82   :  { %287 = vsyncpa [#allocation3], 1 }
  0x83   :  { %289 = vsyncpa [#allocation3 + $0x1], 1 }
  0x84   :  { %290 = vsyncpa [#allocation6], 1 }
  0x85   :  { %292 = vsyncpa [#allocation6 + $0x1], 1 }
  0x86   :  { %293 = vsyncpa [#allocation4], 1 }
  0x87   :  { %295 = vsyncpa [#allocation4 + $0x1], 1 }

</bundles_post_ra>
